<compile_context>
chip_gen: v6e
topology: v6e:2x2x1
jax: 0.10.0
libtpu: 0.0.40
codegen_flags: <defaults>
</compile_context>

<pallas_src>
import jax
import jax.numpy as jnp
from jax.experimental import pallas as pl
from jax.experimental.pallas import tpu as pltpu

LANES = 128           # vreg lane width
HIDDEN = 10           # hidden units of the MLP
STRIP_ROWS = 64       # in-kernel strip: 64x128 f32 = 8 vregs per live array
MAX_TILE_ROWS = 2048  # 2048*128*4B = 1 MiB per tile (in+out double-buffered ~4 MiB)


def mlp_kernel(p_ref, x_ref, o_ref):
    """p_ref: SMEM f32[32] = [w1(10) | b1(10) | w2(10) | b2 | pad].
    x_ref / o_ref: (tile_r, 128) f32 VMEM tiles (batch elements on lanes)."""
    # Hoist all 31 SMEM scalar reads to sregs once (outside the strip loop).
    w1 = [p_ref[j] for j in range(HIDDEN)]
    b1 = [p_ref[HIDDEN + j] for j in range(HIDDEN)]
    w2 = [p_ref[2 * HIDDEN + j] for j in range(HIDDEN)]
    b2 = p_ref[3 * HIDDEN]

    tile_r = x_ref.shape[0]
    strip = min(STRIP_ROWS, tile_r)           # tile_r is always a multiple of strip
    for r in range(tile_r // strip):          # strip-mine: keep live set in vregs
        xs = x_ref[pl.ds(r * strip, strip), :]
        # Start the layer-2 accumulation from the j=0 term (no b2 broadcast pass).
        y = jnp.maximum(xs * w1[0] + b1[0], 0.0) * w2[0]
        for j in range(1, HIDDEN):            # unrolled hidden dim: pure VPU FMAs
            h = jnp.maximum(xs * w1[j] + b1[j], 0.0)   # Linear(1,10) + ReLU, unit j
            y = y + h * w2[j]                          # Linear(10,1) partial sum
        o_ref[pl.ds(r * strip, strip), :] = y + b2


def _round_up(v, m):
    return -(-v // m) * m


def _choose_tile_rows(rows, max_tile_rows):
    """Pick a sublane-aligned tile height; multiple of STRIP_ROWS when large,
    and sized so the grid has >=2 steps whenever rows > STRIP_ROWS (v7x TCs)."""
    if rows <= STRIP_ROWS:
        return max(8, _round_up(rows, 8))     # one small tile, one strip
    half = _round_up(-(-rows // 2), STRIP_ROWS)
    return min(max_tile_rows, half)


def basic_mlp_forward(x, params, *, max_tile_rows=MAX_TILE_ROWS):
    """x: (N, 1) f32.  params: f32[32] packed as [w1|b1|w2|b2|pad].  Returns (N, 1) f32."""
    n = x.shape[0]
    rows = -(-n // LANES)                     # ceil(N / 128)
    tile_r = _choose_tile_rows(rows, max_tile_rows)
    rows_pad = _round_up(rows, tile_r)        # whole number of tiles
    n_pad = rows_pad * LANES

    x_flat = jnp.ravel(x).astype(jnp.float32)
    x2d = jnp.pad(x_flat, (0, n_pad - n)).reshape(rows_pad, LANES)

    out2d = pl.pallas_call(
        mlp_kernel,
        out_shape=jax.ShapeDtypeStruct((rows_pad, LANES), jnp.float32),
        grid=(rows_pad // tile_r,),
        in_specs=[
            pl.BlockSpec(memory_space=pltpu.MemorySpace.SMEM),   # 32 scalars, resident
            pl.BlockSpec((tile_r, LANES), lambda i: (i, 0)),     # lane-dense batch tile
        ],
        out_specs=pl.BlockSpec((tile_r, LANES), lambda i: (i, 0)),
        compiler_params=pltpu.CompilerParams(dimension_semantics=("parallel",)),
        cost_estimate=pl.CostEstimate(flops=50 * n_pad, transcendentals=0,
                                      bytes_accessed=8 * n_pad + 4 * params.size),
    )(params, x2d)

    return out2d.reshape(-1)[:n].reshape(n, 1)


def init_params(key):
    """PyTorch Linear layout: W1 (10,1), b1 (10,), W2 (1,10), b2 (1,).
    Default PyTorch init U(-1/sqrt(fan_in), +1/sqrt(fan_in))."""
    k1, k2, k3, k4 = jax.random.split(key, 4)
    bound1 = 1.0                    # fan_in = 1
    bound2 = 1.0 / (10.0 ** 0.5)    # fan_in = 10
    w1 = jax.random.uniform(k1, (HIDDEN, 1), jnp.float32, -bound1, bound1)
    b1 = jax.random.uniform(k2, (HIDDEN,), jnp.float32, -bound1, bound1)
    w2 = jax.random.uniform(k3, (1, HIDDEN), jnp.float32, -bound2, bound2)
    b2 = jax.random.uniform(k4, (1,), jnp.float32, -bound2, bound2)
    return w1, b1, w2, b2


def pack_params(w1, b1, w2, b2):
    """Flatten the 31 scalars into a single f32[32] SMEM-friendly vector."""
    return jnp.concatenate([
        w1.reshape(-1), b1.reshape(-1), w2.reshape(-1), b2.reshape(-1),
        jnp.zeros((1,), jnp.float32),            # pad to 32
    ]).astype(jnp.float32)


def reference(x, w1, b1, w2, b2):
    """Plain-JAX forward identical to the PyTorch module."""
    h = jnp.maximum(x @ w1.T + b1, 0.0)
    return h @ w2.T + b2


if __name__ == "__main__":
    key = jax.random.PRNGKey(0)
    kx, kp, kx2 = jax.random.split(key, 3)

    w1, b1, w2, b2 = init_params(kp)
    params = pack_params(w1, b1, w2, b2)

    # Small shape consistent with the module: batch of 8 scalar inputs.
    N = 8
    x = jax.random.normal(kx, (N, 1), dtype=jnp.float32)
    out = jax.block_until_ready(basic_mlp_forward(x, params))
    ref = reference(x, w1, b1, w2, b2)
    assert out.shape == (N, 1)
    assert jnp.allclose(out, ref, atol=1e-5, rtol=1e-5)

    # Extra check exercising padding, strip-mining, and a multi-step grid
    # (>=2 grid steps so both v7x TensorCores would get work).
    N2 = 131072 + 5
    x2 = jax.random.normal(kx2, (N2, 1), dtype=jnp.float32)
    out2 = jax.block_until_ready(basic_mlp_forward(x2, params))
    ref2 = reference(x2, w1, b1, w2, b2)
    assert out2.shape == (N2, 1)
    assert jnp.allclose(out2, ref2, atol=1e-5, rtol=1e-5)

    print("KERNEL_OK")
</pallas_src>

<mosaic_0001>
module attributes {stable_mosaic.version = 11 : i64} {
  func.func @mlp_kernel(%arg0: i32, %arg1: memref<32xf32, #tpu.memory_space<smem>>, %arg2: memref<8x128xf32, #tpu.memory_space<vmem>>, %arg3: memref<8x128xf32, #tpu.memory_space<vmem>>) attributes {dimension_semantics = [#tpu.dimension_semantics<parallel>], iteration_bounds = array<i64: 1>, scalar_prefetch = 0 : i64, scratch_operands = 0 : i64, tpu.core_type = #tpu.core_type<tc>, window_params = [{transform_indices = @transform_0, window_bounds = array<i64: 32>}, {transform_indices = @transform_1, window_bounds = array<i64: 8, 128>}, {transform_indices = @transform_2, window_bounds = array<i64: 8, 128>}]} {
    %c0 = arith.constant 0 : index
    %0 = memref.load %arg1[%c0] : memref<32xf32, #tpu.memory_space<smem>>
    %c1 = arith.constant 1 : index
    %1 = memref.load %arg1[%c1] : memref<32xf32, #tpu.memory_space<smem>>
    %c2 = arith.constant 2 : index
    %2 = memref.load %arg1[%c2] : memref<32xf32, #tpu.memory_space<smem>>
    %c3 = arith.constant 3 : index
    %3 = memref.load %arg1[%c3] : memref<32xf32, #tpu.memory_space<smem>>
    %c4 = arith.constant 4 : index
    %4 = memref.load %arg1[%c4] : memref<32xf32, #tpu.memory_space<smem>>
    %c5 = arith.constant 5 : index
    %5 = memref.load %arg1[%c5] : memref<32xf32, #tpu.memory_space<smem>>
    %c6 = arith.constant 6 : index
    %6 = memref.load %arg1[%c6] : memref<32xf32, #tpu.memory_space<smem>>
    %c7 = arith.constant 7 : index
    %7 = memref.load %arg1[%c7] : memref<32xf32, #tpu.memory_space<smem>>
    %c8 = arith.constant 8 : index
    %8 = memref.load %arg1[%c8] : memref<32xf32, #tpu.memory_space<smem>>
    %c9 = arith.constant 9 : index
    %9 = memref.load %arg1[%c9] : memref<32xf32, #tpu.memory_space<smem>>
    %c10 = arith.constant 10 : index
    %10 = memref.load %arg1[%c10] : memref<32xf32, #tpu.memory_space<smem>>
    %c11 = arith.constant 11 : index
    %11 = memref.load %arg1[%c11] : memref<32xf32, #tpu.memory_space<smem>>
    %c12 = arith.constant 12 : index
    %12 = memref.load %arg1[%c12] : memref<32xf32, #tpu.memory_space<smem>>
    %c13 = arith.constant 13 : index
    %13 = memref.load %arg1[%c13] : memref<32xf32, #tpu.memory_space<smem>>
    %c14 = arith.constant 14 : index
    %14 = memref.load %arg1[%c14] : memref<32xf32, #tpu.memory_space<smem>>
    %c15 = arith.constant 15 : index
    %15 = memref.load %arg1[%c15] : memref<32xf32, #tpu.memory_space<smem>>
    %c16 = arith.constant 16 : index
    %16 = memref.load %arg1[%c16] : memref<32xf32, #tpu.memory_space<smem>>
    %c17 = arith.constant 17 : index
    %17 = memref.load %arg1[%c17] : memref<32xf32, #tpu.memory_space<smem>>
    %c18 = arith.constant 18 : index
    %18 = memref.load %arg1[%c18] : memref<32xf32, #tpu.memory_space<smem>>
    %c19 = arith.constant 19 : index
    %19 = memref.load %arg1[%c19] : memref<32xf32, #tpu.memory_space<smem>>
    %c20 = arith.constant 20 : index
    %20 = memref.load %arg1[%c20] : memref<32xf32, #tpu.memory_space<smem>>
    %c21 = arith.constant 21 : index
    %21 = memref.load %arg1[%c21] : memref<32xf32, #tpu.memory_space<smem>>
    %c22 = arith.constant 22 : index
    %22 = memref.load %arg1[%c22] : memref<32xf32, #tpu.memory_space<smem>>
    %c23 = arith.constant 23 : index
    %23 = memref.load %arg1[%c23] : memref<32xf32, #tpu.memory_space<smem>>
    %c24 = arith.constant 24 : index
    %24 = memref.load %arg1[%c24] : memref<32xf32, #tpu.memory_space<smem>>
    %c25 = arith.constant 25 : index
    %25 = memref.load %arg1[%c25] : memref<32xf32, #tpu.memory_space<smem>>
    %c26 = arith.constant 26 : index
    %26 = memref.load %arg1[%c26] : memref<32xf32, #tpu.memory_space<smem>>
    %c27 = arith.constant 27 : index
    %27 = memref.load %arg1[%c27] : memref<32xf32, #tpu.memory_space<smem>>
    %c28 = arith.constant 28 : index
    %28 = memref.load %arg1[%c28] : memref<32xf32, #tpu.memory_space<smem>>
    %c29 = arith.constant 29 : index
    %29 = memref.load %arg1[%c29] : memref<32xf32, #tpu.memory_space<smem>>
    %c30 = arith.constant 30 : index
    %30 = memref.load %arg1[%c30] : memref<32xf32, #tpu.memory_space<smem>>
    %c0_0 = arith.constant 0 : index
    %c0_1 = arith.constant 0 : index
    %31 = vector.load %arg2[%c0_0, %c0_1] : memref<8x128xf32, #tpu.memory_space<vmem>>, vector<8x128xf32>
    %32 = vector.broadcast %0 : f32 to vector<8x128xf32>
    %33 = arith.mulf %31, %32 : vector<8x128xf32>
    %34 = vector.broadcast %10 : f32 to vector<8x128xf32>
    %35 = arith.addf %33, %34 : vector<8x128xf32>
    %cst = arith.constant 0.000000e+00 : f32
    %36 = vector.broadcast %cst : f32 to vector<8x128xf32>
    %37 = arith.maximumf %35, %36 : vector<8x128xf32>
    %38 = vector.broadcast %20 : f32 to vector<8x128xf32>
    %39 = arith.mulf %37, %38 : vector<8x128xf32>
    %40 = vector.broadcast %1 : f32 to vector<8x128xf32>
    %41 = arith.mulf %31, %40 : vector<8x128xf32>
    %42 = vector.broadcast %11 : f32 to vector<8x128xf32>
    %43 = arith.addf %41, %42 : vector<8x128xf32>
    %cst_2 = arith.constant 0.000000e+00 : f32
    %44 = vector.broadcast %cst_2 : f32 to vector<8x128xf32>
    %45 = arith.maximumf %43, %44 : vector<8x128xf32>
    %46 = vector.broadcast %21 : f32 to vector<8x128xf32>
    %47 = arith.mulf %45, %46 : vector<8x128xf32>
    %48 = arith.addf %39, %47 : vector<8x128xf32>
    %49 = vector.broadcast %2 : f32 to vector<8x128xf32>
    %50 = arith.mulf %31, %49 : vector<8x128xf32>
    %51 = vector.broadcast %12 : f32 to vector<8x128xf32>
    %52 = arith.addf %50, %51 : vector<8x128xf32>
    %cst_3 = arith.constant 0.000000e+00 : f32
    %53 = vector.broadcast %cst_3 : f32 to vector<8x128xf32>
    %54 = arith.maximumf %52, %53 : vector<8x128xf32>
    %55 = vector.broadcast %22 : f32 to vector<8x128xf32>
    %56 = arith.mulf %54, %55 : vector<8x128xf32>
    %57 = arith.addf %48, %56 : vector<8x128xf32>
    %58 = vector.broadcast %3 : f32 to vector<8x128xf32>
    %59 = arith.mulf %31, %58 : vector<8x128xf32>
    %60 = vector.broadcast %13 : f32 to vector<8x128xf32>
    %61 = arith.addf %59, %60 : vector<8x128xf32>
    %cst_4 = arith.constant 0.000000e+00 : f32
    %62 = vector.broadcast %cst_4 : f32 to vector<8x128xf32>
    %63 = arith.maximumf %61, %62 : vector<8x128xf32>
    %64 = vector.broadcast %23 : f32 to vector<8x128xf32>
    %65 = arith.mulf %63, %64 : vector<8x128xf32>
    %66 = arith.addf %57, %65 : vector<8x128xf32>
    %67 = vector.broadcast %4 : f32 to vector<8x128xf32>
    %68 = arith.mulf %31, %67 : vector<8x128xf32>
    %69 = vector.broadcast %14 : f32 to vector<8x128xf32>
    %70 = arith.addf %68, %69 : vector<8x128xf32>
    %cst_5 = arith.constant 0.000000e+00 : f32
    %71 = vector.broadcast %cst_5 : f32 to vector<8x128xf32>
    %72 = arith.maximumf %70, %71 : vector<8x128xf32>
    %73 = vector.broadcast %24 : f32 to vector<8x128xf32>
    %74 = arith.mulf %72, %73 : vector<8x128xf32>
    %75 = arith.addf %66, %74 : vector<8x128xf32>
    %76 = vector.broadcast %5 : f32 to vector<8x128xf32>
    %77 = arith.mulf %31, %76 : vector<8x128xf32>
    %78 = vector.broadcast %15 : f32 to vector<8x128xf32>
    %79 = arith.addf %77, %78 : vector<8x128xf32>
    %cst_6 = arith.constant 0.000000e+00 : f32
    %80 = vector.broadcast %cst_6 : f32 to vector<8x128xf32>
    %81 = arith.maximumf %79, %80 : vector<8x128xf32>
    %82 = vector.broadcast %25 : f32 to vector<8x128xf32>
    %83 = arith.mulf %81, %82 : vector<8x128xf32>
    %84 = arith.addf %75, %83 : vector<8x128xf32>
    %85 = vector.broadcast %6 : f32 to vector<8x128xf32>
    %86 = arith.mulf %31, %85 : vector<8x128xf32>
    %87 = vector.broadcast %16 : f32 to vector<8x128xf32>
    %88 = arith.addf %86, %87 : vector<8x128xf32>
    %cst_7 = arith.constant 0.000000e+00 : f32
    %89 = vector.broadcast %cst_7 : f32 to vector<8x128xf32>
    %90 = arith.maximumf %88, %89 : vector<8x128xf32>
    %91 = vector.broadcast %26 : f32 to vector<8x128xf32>
    %92 = arith.mulf %90, %91 : vector<8x128xf32>
    %93 = arith.addf %84, %92 : vector<8x128xf32>
    %94 = vector.broadcast %7 : f32 to vector<8x128xf32>
    %95 = arith.mulf %31, %94 : vector<8x128xf32>
    %96 = vector.broadcast %17 : f32 to vector<8x128xf32>
    %97 = arith.addf %95, %96 : vector<8x128xf32>
    %cst_8 = arith.constant 0.000000e+00 : f32
    %98 = vector.broadcast %cst_8 : f32 to vector<8x128xf32>
    %99 = arith.maximumf %97, %98 : vector<8x128xf32>
    %100 = vector.broadcast %27 : f32 to vector<8x128xf32>
    %101 = arith.mulf %99, %100 : vector<8x128xf32>
    %102 = arith.addf %93, %101 : vector<8x128xf32>
    %103 = vector.broadcast %8 : f32 to vector<8x128xf32>
    %104 = arith.mulf %31, %103 : vector<8x128xf32>
    %105 = vector.broadcast %18 : f32 to vector<8x128xf32>
    %106 = arith.addf %104, %105 : vector<8x128xf32>
    %cst_9 = arith.constant 0.000000e+00 : f32
    %107 = vector.broadcast %cst_9 : f32 to vector<8x128xf32>
    %108 = arith.maximumf %106, %107 : vector<8x128xf32>
    %109 = vector.broadcast %28 : f32 to vector<8x128xf32>
    %110 = arith.mulf %108, %109 : vector<8x128xf32>
    %111 = arith.addf %102, %110 : vector<8x128xf32>
    %112 = vector.broadcast %9 : f32 to vector<8x128xf32>
    %113 = arith.mulf %31, %112 : vector<8x128xf32>
    %114 = vector.broadcast %19 : f32 to vector<8x128xf32>
    %115 = arith.addf %113, %114 : vector<8x128xf32>
    %cst_10 = arith.constant 0.000000e+00 : f32
    %116 = vector.broadcast %cst_10 : f32 to vector<8x128xf32>
    %117 = arith.maximumf %115, %116 : vector<8x128xf32>
    %118 = vector.broadcast %29 : f32 to vector<8x128xf32>
    %119 = arith.mulf %117, %118 : vector<8x128xf32>
    %120 = arith.addf %111, %119 : vector<8x128xf32>
    %121 = vector.broadcast %30 : f32 to vector<8x128xf32>
    %122 = arith.addf %120, %121 : vector<8x128xf32>
    %c0_11 = arith.constant 0 : index
    %c0_12 = arith.constant 0 : index
    %123 = vector.load %arg3[%c0_11, %c0_12] : memref<8x128xf32, #tpu.memory_space<vmem>>, vector<8x128xf32>
    tpu.vector_store %arg3[%c0_11, %c0_12], %122 {strides = array<i32>} : memref<8x128xf32, #tpu.memory_space<vmem>>, vector<8x128xf32>,
    return
  }
  func.func @transform_0(%arg0: i32) -> i32 {
    %c0_i32 = arith.constant 0 : i32
    %c0_i32_0 = arith.constant 0 : i32
    return %c0_i32 : i32
  }
  func.func @transform_1(%arg0: i32) -> (i32, i32) {
    %c0_i32 = arith.constant 0 : i32
    %c0_i32_0 = arith.constant 0 : i32
    return %arg0, %c0_i32 : i32, i32
  }
  func.func @transform_2(%arg0: i32) -> (i32, i32) {
    %c0_i32 = arith.constant 0 : i32
    %c0_i32_0 = arith.constant 0 : i32
    return %arg0, %c0_i32 : i32, i32
  }
}

</mosaic_0001>

<bundles_post_ra>
// kernel: tpu_custom_call.1
= control target key start
LH: loop header
LB: loop body
LE: loop exit
PB: predicated region body
PF: predicated region fallthrough
CT: control target
= control target key end

     0   :  { %7 = vsyncpa [#allocation5], 0  ;;  %s339_s0 = inlined_call_operand.hbm [shape: f32[32], index: 0, kind: input, shape index: {}]   ;;  %s340_s1 = inlined_call_operand.hbm [shape: f32[8,128], index: 1, kind: input, shape index: {}]   ;;  %s341_s2 = inlined_call_operand.hbm [shape: f32[8,128], index: 2, kind: output, shape index: {}]  }
   0x1   :  { %8 = vsyncpa [#allocation3], 0 }
   0x2   :  { %9 = vsyncpa [#allocation4], 0  ;;  %s252_s9 = smov [#allocation2]   ;;  %s253_s12 = smov [#allocation6]  }
   0x3   :  { %17 = dma.hbm_to_smem %s339_s0, 16, %s252_s9, [#allocation5]  }
   0x4   :  { %s24_s13 = sshll.u32 %s253_s12, 4  ;;  %s25_s13 = int_to_ptr.vmem [resolvable:$true] %s24_s13 }
   0x5   :  { %s214_s14 = scalar_lea.vmem %s25_s13, 128  ;;  %p219_p1 = scmp.lt.s32.totalorder %s25_s13, %s25_s13 }
   0x6   :  { %p215_p0 = scmp.ne.s32.totalorder %s25_s13, %s214_s14  ;;  %p220_p2 = scmp.lt.s32.totalorder %s214_s14, %s214_s14 }
   0x8   :  { %p221_p3 = por %p220_p2, %p219_p1 }
   0xa   :  { %p222_p4 = pnand %p221_p3, %p215_p0 }
   0xc   :  { %225 = shalt.err (!%p222_p4)
}
   0xd   :  { %27 = dma.hbm_to_vmem [thread:$0]  %s340_s1, 128, %s25_s13, [#allocation3]  }
   0xe   :  { %246 = dma.done.wait [#allocation5], 16  }
   0xf   :  { %247 = vsyncadd [#allocation5], 4294967280 }
  0x10   :  { %248 = dma.done.wait [#allocation3], 128  }
  0x11   :  { %249 = vsyncadd [#allocation3], 4294967168 }
  0x12   :  { %34 = sfence }
  0x13   :  { %s35_s0 = sld [smem:[#allocation2]]  ;;  %v66_v0 = vld [vmem:[#allocation6] sm:$0xff] }
  0x14   :  { %s165_s17 = sld [smem:[#allocation2 + $0x1]] }
  0x15   :  { %s166_s18 = sld [smem:[#allocation2 + $0x2]] }
  0x16   :  { %s167_s19 = sld [smem:[#allocation2 + $0x3]] }
  0x17   :  { %s276_s20 = sld [smem:[#allocation2 + $0x4]] }
  0x18   :  { %s278_s21 = sld [smem:[#allocation2 + $0x5]] }
  0x19   :  { %s280_s22 = sld [smem:[#allocation2 + $0x6]]  ;;  %v67_v1 = vstv %s35_s0 }
  0x1a   :  { %s282_s23 = sld [smem:[#allocation2 + $0x7]]  ;;  %v74_v2 = vstv %s165_s17  ;;  %v68_v4 = vmul.f32 %v67_v1, %v66_v0  ;;  %s254_s17 = smov [#allocation7]  }
  0x1b   :  { %s284_s24 = sld [smem:[#allocation2 + $0x8]]  ;;  %v82_v3 = vstv %s166_s18  ;;  %v75_v7 = vmul.f32 %v74_v2, %v66_v0  ;;  %s155_s18 = sshll.u32 %s254_s17, 4  ;;  %s156_s18 = int_to_ptr.vmem [resolvable:$true] %s155_s18 }
  0x1c   :  { %s286_s1 = sld [smem:[#allocation2 + $0x9]]  ;;  %v90_v5 = vstv %s167_s19  ;;  %v83_v9 = vmul.f32 %v82_v3, %v66_v0  ;;  %s226_s19 = scalar_lea.vmem %s156_s18, 128 }
  0x1d   :  { %s174_s25 = sld [smem:[#allocation2 + $0xa]]  ;;  %v98_v10 = vstv %s276_s20  ;;  %v91_v12 = vmul.f32 %v90_v5, %v66_v0  ;;  %p227_p5 = scmp.ne.s32.totalorder %s156_s18, %s226_s19 }
  0x1e   :  { %s175_s26 = sld [smem:[#allocation2 + $0xb]]  ;;  %v106_v13 = vstv %s278_s21  ;;  %v99_v17 = vmul.f32 %v98_v10, %v66_v0  ;;  %p231_p6 = scmp.lt.s32.totalorder %s156_s18, %s156_s18 }
  0x1f   :  { %s176_s27 = sld [smem:[#allocation2 + $0xc]]  ;;  %v107_v20 = vmul.f32 %v106_v13, %v66_v0  ;;  %v114_v21 = vstv %s280_s22  ;;  %p232_p7 = scmp.lt.s32.totalorder %s226_s19, %s226_s19 }
  0x20   :  { %s177_s28 = sld [smem:[#allocation2 + $0xd]]  ;;  %v122_v25 = vstv %s282_s23  ;;  %v115_v29 = vmul.f32 %v114_v21, %v66_v0 }
  0x21   :  { %s288_s29 = sld [smem:[#allocation2 + $0xe]]  ;;  %v130_v26 = vstv %s284_s24  ;;  %v123_v36 = vmul.f32 %v122_v25, %v66_v0  ;;  %p233_p8 = por %p232_p7, %p231_p6 }
  0x22   :  { %s290_s30 = sld [smem:[#allocation2 + $0xf]]  ;;  %v138_v30 = vstv %s286_s1  ;;  %v131_v37 = vmul.f32 %v130_v26, %v66_v0 }
  0x23   :  { %s292_s3 = sld [smem:[#allocation2 + $0x10]]  ;;  %v69_v6 = vstv %s174_s25  ;;  %v139_v41 = vmul.f32 %v138_v30, %v66_v0  ;;  %p234_p9 = pnand %p233_p8, %p227_p5 }
  0x24   :  { %s294_s4 = sld [smem:[#allocation2 + $0x11]]  ;;  %v76_v8 = vstv %s175_s26  ;;  %v70_v14 = vadd.f32 %v69_v6, %v68_v4 }
  0x25   :  { %s297_s5 = sld [smem:[#allocation2 + $0x12]]  ;;  %v84_v11 = vstv %s176_s27  ;;  %v77_v16 = vadd.f32 %v76_v8, %v75_v7 }
  0x26   :  { %s300_s6 = sld [smem:[#allocation2 + $0x13]]  ;;  %v92_v15 = vstv %s177_s28  ;;  %v85_v18 = vadd.f32 %v84_v11, %v83_v9  ;;  %v71_v24 = vmax.f32 %v70_v14, 0.0 }
  0x27   :  { %s184_s7 = sld [smem:[#allocation2 + $0x14]]  ;;  %v100_v19 = vstv %s288_s29  ;;  %v93_v22 = vadd.f32 %v92_v15, %v91_v12  ;;  %v78_v27 = vmax.f32 %v77_v16, 0.0 }
  0x28   :  { %s302_s8 = sld [smem:[#allocation2 + $0x15]]  ;;  %v108_v23 = vstv %s290_s30  ;;  %v101_v28 = vadd.f32 %v100_v19, %v99_v17  ;;  %v86_v31 = vmax.f32 %v85_v18, 0.0 }
  0x29   :  { %s306_s9 = sld [smem:[#allocation2 + $0x16]]  ;;  %v109_v32 = vadd.f32 %v108_v23, %v107_v20  ;;  %v116_v33 = vstv %s292_s3  ;;  %v94_v35 = vmax.f32 %v93_v22, 0.0 }
  0x2a   :  { %s309_s10 = sld [smem:[#allocation2 + $0x17]]  ;;  %v124_v40 = vstv %s294_s4  ;;  %v102_v44 = vmax.f32 %v101_v28, 0.0  ;;  %v117_v45 = vadd.f32 %v116_v33, %v115_v29 }
  0x2b   :  { %s313_s11 = sld [smem:[#allocation2 + $0x18]]  ;;  %v110_v48 = vmax.f32 %v109_v32, 0.0  ;;  %v132_v49 = vstv %s297_s5  ;;  %v125_v53 = vadd.f32 %v124_v40, %v123_v36 }
  0x2c   :  { %s316_s12 = sld [smem:[#allocation2 + $0x19]]  ;;  %v140_v55 = vstv %s300_s6  ;;  %v118_v58 = vmax.f32 %v117_v45, 0.0  ;;  %v133_v59 = vadd.f32 %v132_v49, %v131_v37 }
  0x2d   :  { %s319_s13 = sld [smem:[#allocation2 + $0x1a]]  ;;  %v72_v34 = vstv %s184_s7  ;;  %v126_v63 = vmax.f32 %v125_v53, 0.0  ;;  %v141_v0 = vadd.f32 %v140_v55, %v139_v41 }
  0x2e   :  { %s321_s14 = sld [smem:[#allocation2 + $0x1b]]  ;;  %v73_v38 = vmul.f32 %v72_v34, %v71_v24  ;;  %v79_v39 = vstv %s302_s8  ;;  %v134_v4 = vmax.f32 %v133_v59, 0.0 }
  0x2f   :  { %v80_v42 = vmul.f32 %v79_v39, %v78_v27  ;;  %v87_v43 = vstv %s306_s9  ;;  %s326_s15 = sld [smem:[#allocation2 + $0x1c]]  ;;  %v142_v8 = vmax.f32 %v141_v0, 0.0 }
  0x30   :  { %v88_v46 = vmul.f32 %v87_v43, %v86_v31  ;;  %v95_v47 = vstv %s309_s10  ;;  %s193_s16 = sld [smem:[#allocation2 + $0x1d]] }
  0x31   :  { %v81_v50 = vadd.f32 %v80_v42, %v73_v38  ;;  %v96_v51 = vmul.f32 %v95_v47, %v94_v35  ;;  %v103_v52 = vstv %s313_s11  ;;  %s194_s0 = sld [smem:[#allocation2 + $0x1e]] }
  0x32   :  { %v111_v54 = vstv %s316_s12  ;;  %v104_v57 = vmul.f32 %v103_v52, %v102_v44 }
  0x33   :  { %v89_v56 = vadd.f32 %v88_v46, %v81_v50  ;;  %v119_v60 = vstv %s319_s13  ;;  %v112_v62 = vmul.f32 %v111_v54, %v110_v48 }
  0x34   :  { %v127_v1 = vstv %s321_s14  ;;  %v120_v3 = vmul.f32 %v119_v60, %v118_v58 }
  0x35   :  { %v97_v61 = vadd.f32 %v96_v51, %v89_v56  ;;  %v135_v5 = vstv %s326_s15  ;;  %v128_v7 = vmul.f32 %v127_v1, %v126_v63 }
  0x36   :  { %v143_v9 = vstv %s193_s16  ;;  %v136_v11 = vmul.f32 %v135_v5, %v134_v4 }
  0x37   :  { %v105_v2 = vadd.f32 %v104_v57, %v97_v61  ;;  %v144_v13 = vmul.f32 %v143_v9, %v142_v8  ;;  %v146_v15 = vstv %s194_s0 }
  0x39   :  { %v113_v6 = vadd.f32 %v112_v62, %v105_v2 }
  0x3b   :  { %v121_v10 = vadd.f32 %v120_v3, %v113_v6 }
  0x3d   :  { %v129_v12 = vadd.f32 %v128_v7, %v121_v10 }
  0x3f   :  { %v137_v14 = vadd.f32 %v136_v11, %v129_v12 }
  0x41   :  { %v145_v16 = vadd.f32 %v144_v13, %v137_v14 }
  0x43   :  { %v147_v17 = vadd.f32 %v146_v15, %v145_v16 }
  0x45   :  { %148 = vst [vmem:[#allocation7] sm:$0xff] %v147_v17 }
  0x46   :  { %237 = shalt.err (!%p234_p9)
}
  0x47   :  { %158 = dma.vmem_to_hbm [thread:$0]  %s156_s18, 128, %s341_s2, [#allocation4]  }
  0x48   :  { %250 = dma.done.wait [#allocation4], 128  }
  0x49   :  { %251 = vsyncadd [#allocation4], 4294967168 }
  0x4a   :  { %162 = vsyncpa [#allocation3], 1 }
  0x4b   :  { %163 = vsyncpa [#allocation4], 1 }
  0x4c   :  { %164 = vsyncpa [#allocation5], 1 }

</bundles_post_ra>
